<compile_context>
chip_gen: v5e
topology: v5e:2x2
jax: 0.10.0
libtpu: 0.0.40
codegen_flags: <defaults>
</compile_context>

<pallas_src>
import functools

import jax
import jax.numpy as jnp
from jax import lax
from jax.experimental import pallas as pl
from jax.experimental.pallas import tpu as pltpu


# Tables whose (double-buffered) VMEM footprint stays below this are gathered
# on-chip: 2 x 8 MiB + output blocks stays well under the 32 MiB scoped-VMEM
# default on v5e / v6e / v7x (v7x only has 64 MiB physical VMEM).
_VMEM_RESIDENT_BYTES = 8 * 1024 * 1024

# Max batch rows gathered per grid step (multiple of 8).
_MAX_BATCH_TILE = 256


# ------------------------- feature descriptor classes ------------------------

class DenseFeature:
    def __init__(self, name):
        self.name = name
        self.embed_dim = 1

    def __repr__(self):
        return f"<DenseFeature {self.name}>"


class SparseFeature:
    def __init__(self, name, vocab_size, embed_dim=None, shared_with=None,
                 padding_idx=None):
        self.name = name
        self.vocab_size = vocab_size
        self.embed_dim = embed_dim
        self.shared_with = shared_with
        self.padding_idx = padding_idx

    def __repr__(self):
        return (f"<SparseFeature {self.name} with Embedding shape "
                f"({self.vocab_size}, {self.embed_dim})>")


# ------------------------- fast path: VMEM-resident ---------------------------

def _resident_gather_kernel(num_features, tile_b, batch_pad, embed_dim,
                            rows_ref, tbl_ref, out_ref):
    """Gather TB*F rows from the VMEM-resident stacked table.

    rows_ref : (F * B_pad,) int32 in SMEM (scalar prefetch), flat row ids.
    tbl_ref  : (R, D) f32 in VMEM, grid-invariant (loaded once, reused).
    out_ref  : (TB, F * D) f32 lane-dense output block for this batch tile.
    """
    base = pl.program_id(0) * tile_b
    for f in range(num_features):                       # static, small
        feat_off = f * batch_pad
        col = f * embed_dim

        def body(i, carry, feat_off=feat_off, col=col):
            row = rows_ref[feat_off + base + i]
            out_ref[pl.ds(i, 1), pl.ds(col, embed_dim)] = \
                tbl_ref[pl.ds(row, 1), :]
            return carry

        lax.fori_loop(0, tile_b, body, 0)


def _gather_vmem_resident(rows, flat_tables):
    """emb[b, f, :] = flat_tables[rows[f, b], :] with the table kept in VMEM."""
    F, B = rows.shape
    R, D = flat_tables.shape

    tile_b = min(_MAX_BATCH_TILE, pl.cdiv(B, 8) * 8)     # multiple of 8
    b_pad = pl.cdiv(B, tile_b) * tile_b
    rows_flat = jnp.pad(rows, ((0, 0), (0, b_pad - B))).reshape(-1)  # (F*B_pad,)

    out = pl.pallas_call(
        functools.partial(_resident_gather_kernel, F, tile_b, b_pad, D),
        out_shape=jax.ShapeDtypeStruct((b_pad, F * D), flat_tables.dtype),
        grid_spec=pltpu.PrefetchScalarGridSpec(
            num_scalar_prefetch=1,
            grid=(b_pad // tile_b,),
            # Grid-invariant index_map -> the table is DMA'd to VMEM only once.
            in_specs=[pl.BlockSpec((R, D), lambda t, rows_ref: (0, 0))],
            # Lane-dense (TB, F*D) output slab per batch tile.
            out_specs=pl.BlockSpec((tile_b, F * D),
                                   lambda t, rows_ref: (t, 0)),
        ),
        compiler_params=pltpu.CompilerParams(
            dimension_semantics=("parallel",)),
    )(rows_flat, flat_tables)
    return out[:B].reshape(B, F, D)


# --------------------- fallback: HBM row gather (big tables) ------------------

def _hbm_row_gather_kernel(num_features, rows_ref, *refs):
    """Copy the F gathered rows into the (1, F, D) output block."""
    del rows_ref
    out_ref = refs[num_features]
    for f in range(num_features):
        out_ref[0, f, :] = refs[f][...].reshape(-1)


def _gather_hbm_rows(rows, flat_tables):
    F, B = rows.shape
    _, D = flat_tables.shape
    rows_flat = rows.reshape(-1)                         # (F*B,) flat in SMEM

    def table_spec(f):
        # Data-dependent row gather: only the needed (1, D) row is DMA'd.
        return pl.BlockSpec(
            (pl.Element(1), D),
            lambda b, rows_ref, f=f: (rows_ref[f * B + b], 0))

    return pl.pallas_call(
        functools.partial(_hbm_row_gather_kernel, F),
        out_shape=jax.ShapeDtypeStruct((B, F, D), flat_tables.dtype),
        grid_spec=pltpu.PrefetchScalarGridSpec(
            num_scalar_prefetch=1,
            grid=(B,),
            in_specs=[table_spec(f) for f in range(F)],
            out_specs=pl.BlockSpec((1, F, D), lambda b, rows_ref: (b, 0, 0)),
        ),
        compiler_params=pltpu.CompilerParams(
            dimension_semantics=("parallel",)),
    )(rows_flat, *([flat_tables] * F))


def embedding_gather(rows, flat_tables):
    """emb[b, f, :] = flat_tables[rows[f, b], :]  ->  (B, F, D)."""
    table_bytes = flat_tables.size * flat_tables.dtype.itemsize
    if table_bytes <= _VMEM_RESIDENT_BYTES:
        return _gather_vmem_resident(rows, flat_tables)
    return _gather_hbm_rows(rows, flat_tables)


# ---------------------------- EmbeddingLayer (JAX) ---------------------------

class EmbeddingLayer:
    """JAX/Pallas port of the PyTorch EmbeddingLayer.

    Embedding tables are initialized deterministically with
    normal(mean=0, std=1e-4), matching RandomNormal(0, 0.0001).
    """

    def __init__(self, features, key):
        self.features = features
        self.embed_dict = {}
        self.n_dense = 0

        owner_names = []
        for fea in features:
            if fea.name in self.embed_dict:
                continue
            if isinstance(fea, SparseFeature) and fea.shared_with is None:
                key, sub = jax.random.split(key)
                self.embed_dict[fea.name] = 0.0001 * jax.random.normal(
                    sub, (fea.vocab_size, fea.embed_dim), dtype=jnp.float32)
                owner_names.append(fea.name)
            elif isinstance(fea, DenseFeature):
                self.n_dense += 1

        # Stack all unique tables ONCE into a single (R, D) HBM tensor. Each
        # table is padded independently to a multiple of 8 rows (sublane
        # alignment); row_base is a running prefix sum.
        self._row_base = {}
        self._flat_tables = None
        if owner_names:
            dims = {self.embed_dict[n].shape[1] for n in owner_names}
            assert len(dims) == 1, \
                "all sparse embedding tables must share embed_dim"
            padded, offset = [], 0
            for n in owner_names:
                tbl = self.embed_dict[n]
                vpad = pl.cdiv(tbl.shape[0], 8) * 8
                padded.append(jnp.pad(tbl, ((0, vpad - tbl.shape[0]), (0, 0))))
                self._row_base[n] = offset
                offset += vpad
            self._flat_tables = jnp.concatenate(padded, axis=0)

    def forward(self, x, features, squeeze_dim=False):
        sparse_feats = [f for f in features if isinstance(f, SparseFeature)]
        dense_feats = [f for f in features if isinstance(f, DenseFeature)]
        sparse_exists = len(sparse_feats) > 0
        dense_exists = len(dense_feats) > 0

        sparse_emb = None
        if sparse_exists:
            rows = []
            for f in sparse_feats:
                owner = f.name if f.shared_with is None else f.shared_with
                owner_vocab = self.embed_dict[owner].shape[0]
                # Clip against the *owner* table so the gather can never read
                # padding rows or another table (torch would raise on OOB).
                idx = jnp.clip(x[f.name].astype(jnp.int32), 0, owner_vocab - 1)
                rows.append(idx + self._row_base[owner])
            rows = jnp.stack(rows, axis=0)                   # (F, B) int32
            # Kernel emits (B, F, D) directly -> no wrapper transpose.
            sparse_emb = embedding_gather(rows, self._flat_tables)

        dense_values = None
        if dense_exists:
            dense_values = jnp.stack(
                [x[f.name].astype(jnp.float32) for f in dense_feats],
                axis=1)                                      # (B, n_dense)

        if squeeze_dim:
            if dense_exists and not sparse_exists:
                return dense_values
            elif sparse_exists and not dense_exists:
                return sparse_emb.reshape(sparse_emb.shape[0], -1)
            elif dense_exists and sparse_exists:
                return jnp.concatenate(
                    [sparse_emb.reshape(sparse_emb.shape[0], -1), dense_values],
                    axis=1)
            else:
                raise ValueError("The input features can not be empty")
        else:
            if sparse_exists:
                return sparse_emb
            raise ValueError(
                "If keep the original shape:[batch_size, num_features, "
                "embed_dim], expected SparseFeatures in feature list")


# ----------------------------------- main -------------------------------------

if __name__ == "__main__":
    batch = 8
    embed_dim = 32

    features = [
        SparseFeature("user_id", vocab_size=100, embed_dim=embed_dim),
        SparseFeature("item_id", vocab_size=50, embed_dim=embed_dim),
        SparseFeature("hist_item_id", vocab_size=50, embed_dim=embed_dim,
                      shared_with="item_id"),
        DenseFeature("price"),
        DenseFeature("age"),
    ]

    key = jax.random.PRNGKey(0)
    layer = EmbeddingLayer(features, key)

    k1, k2, k3, k4, k5 = jax.random.split(jax.random.PRNGKey(0), 5)
    x = {
        "user_id": jax.random.randint(k1, (batch,), 0, 100),
        "item_id": jax.random.randint(k2, (batch,), 0, 50),
        "hist_item_id": jax.random.randint(k3, (batch,), 0, 50),
        "price": jax.random.normal(k4, (batch,)),
        "age": jax.random.normal(k5, (batch,)),
    }

    # squeeze_dim=False -> (batch, num_sparse, embed_dim)
    out_sparse = layer.forward(x, features, squeeze_dim=False)
    # squeeze_dim=True  -> (batch, num_sparse*embed_dim + num_dense)
    out_flat = layer.forward(x, features, squeeze_dim=True)
    jax.block_until_ready((out_sparse, out_flat))

    # ----- pure-JAX reference check -----
    def ref_forward():
        sp = []
        for f in [features[0], features[1], features[2]]:
            tbl = layer.embed_dict[
                f.name if f.shared_with is None else f.shared_with]
            sp.append(jnp.take(tbl, x[f.name].astype(jnp.int32),
                               axis=0)[:, None, :])
        sp = jnp.concatenate(sp, axis=1)                        # (B, 3, D)
        dn = jnp.stack([x["price"].astype(jnp.float32),
                        x["age"].astype(jnp.float32)], axis=1)  # (B, 2)
        flat = jnp.concatenate([sp.reshape(batch, -1), dn], axis=1)
        return sp, flat

    ref_sparse, ref_flat = ref_forward()
    assert out_sparse.shape == (batch, 3, embed_dim)
    assert out_flat.shape == (batch, 3 * embed_dim + 2)
    assert jnp.allclose(out_sparse, ref_sparse, atol=1e-6, rtol=1e-6)
    assert jnp.allclose(out_flat, ref_flat, atol=1e-6, rtol=1e-6)

    print("KERNEL_OK")
</pallas_src>

<mosaic_0001>
module attributes {stable_mosaic.version = 11 : i64} {
  func.func @_resident_gather_kernel(%arg0: i32, %arg1: memref<24xi32, #tpu.memory_space<smem>>, %arg2: memref<160x32xf32, #tpu.memory_space<vmem>>, %arg3: memref<8x96xf32, #tpu.memory_space<vmem>>) attributes {dimension_semantics = [#tpu.dimension_semantics<parallel>], iteration_bounds = array<i64: 1>, scalar_prefetch = 1 : i64, scratch_operands = 0 : i64, tpu.core_type = #tpu.core_type<tc>, window_params = [{pipeline_mode = #tpu.pipeline_mode<synchronous>, transform_indices = @transform_0, window_bounds = array<i64: 160, 32>}, {transform_indices = @transform_1, window_bounds = array<i64: 8, 96>}]} {
    %c8_i32 = arith.constant 8 : i32
    %0 = arith.muli %arg0, %c8_i32 : i32
    %c0_i32 = arith.constant 0 : i32
    %c8_i32_0 = arith.constant 8 : i32
    %1 = arith.addi %c0_i32, %c8_i32_0 : i32
    %c1_i32 = arith.constant 1 : i32
    scf.for %arg4 = %c0_i32 to %1 step %c1_i32  : i32 {
      %c0_i32_10 = arith.constant 0 : i32
      %4 = arith.addi %c0_i32_10, %0 : i32
      %5 = arith.addi %4, %arg4 : i32
      %6 = arith.index_cast %5 : i32 to index
      %7 = memref.load %arg1[%6] : memref<24xi32, #tpu.memory_space<smem>>
      %8 = arith.index_cast %7 : i32 to index
      %c0 = arith.constant 0 : index
      %9 = vector.load %arg2[%8, %c0] : memref<160x32xf32, #tpu.memory_space<vmem>>, vector<1x32xf32>
      %10 = arith.index_cast %arg4 : i32 to index
      %c0_11 = arith.constant 0 : index
      %11 = vector.load %arg3[%10, %c0_11] : memref<8x96xf32, #tpu.memory_space<vmem>>, vector<1x32xf32>
      tpu.vector_store %arg3[%10, %c0_11], %9 {strides = array<i32>} : memref<8x96xf32, #tpu.memory_space<vmem>>, vector<1x32xf32>,
    }
    %c8_i32_1 = arith.constant 8 : i32
    %c0_i32_2 = arith.constant 0 : i32
    %c8_i32_3 = arith.constant 8 : i32
    %2 = arith.addi %c0_i32_2, %c8_i32_3 : i32
    %c1_i32_4 = arith.constant 1 : i32
    scf.for %arg4 = %c0_i32_2 to %2 step %c1_i32_4  : i32 {
      %c8_i32_10 = arith.constant 8 : i32
      %4 = arith.addi %c8_i32_10, %0 : i32
      %5 = arith.addi %4, %arg4 : i32
      %6 = arith.index_cast %5 : i32 to index
      %7 = memref.load %arg1[%6] : memref<24xi32, #tpu.memory_space<smem>>
      %8 = arith.index_cast %7 : i32 to index
      %c0 = arith.constant 0 : index
      %9 = vector.load %arg2[%8, %c0] : memref<160x32xf32, #tpu.memory_space<vmem>>, vector<1x32xf32>
      %10 = arith.index_cast %arg4 : i32 to index
      %c32 = arith.constant 32 : index
      %11 = vector.load %arg3[%10, %c32] : memref<8x96xf32, #tpu.memory_space<vmem>>, vector<1x32xf32>
      tpu.vector_store %arg3[%10, %c32], %9 {strides = array<i32>} : memref<8x96xf32, #tpu.memory_space<vmem>>, vector<1x32xf32>,
    }
    %c8_i32_5 = arith.constant 8 : i32
    %c0_i32_6 = arith.constant 0 : i32
    %c8_i32_7 = arith.constant 8 : i32
    %3 = arith.addi %c0_i32_6, %c8_i32_7 : i32
    %c1_i32_8 = arith.constant 1 : i32
    scf.for %arg4 = %c0_i32_6 to %3 step %c1_i32_8  : i32 {
      %c16_i32 = arith.constant 16 : i32
      %4 = arith.addi %c16_i32, %0 : i32
      %5 = arith.addi %4, %arg4 : i32
      %6 = arith.index_cast %5 : i32 to index
      %7 = memref.load %arg1[%6] : memref<24xi32, #tpu.memory_space<smem>>
      %8 = arith.index_cast %7 : i32 to index
      %c0 = arith.constant 0 : index
      %9 = vector.load %arg2[%8, %c0] : memref<160x32xf32, #tpu.memory_space<vmem>>, vector<1x32xf32>
      %10 = arith.index_cast %arg4 : i32 to index
      %c64 = arith.constant 64 : index
      %11 = vector.load %arg3[%10, %c64] : memref<8x96xf32, #tpu.memory_space<vmem>>, vector<1x32xf32>
      tpu.vector_store %arg3[%10, %c64], %9 {strides = array<i32>} : memref<8x96xf32, #tpu.memory_space<vmem>>, vector<1x32xf32>,
    }
    %c8_i32_9 = arith.constant 8 : i32
    return
  }
  func.func @transform_0(%arg0: i32, %arg1: memref<24xi32, #tpu.memory_space<smem>>) -> (i32, i32) {
    %c0_i32 = arith.constant 0 : i32
    %c0_i32_0 = arith.constant 0 : i32
    %c0_i32_1 = arith.constant 0 : i32
    return %c0_i32, %c0_i32_0 : i32, i32
  }
  func.func @transform_1(%arg0: i32, %arg1: memref<24xi32, #tpu.memory_space<smem>>) -> (i32, i32) {
    %c0_i32 = arith.constant 0 : i32
    %c0_i32_0 = arith.constant 0 : i32
    return %arg0, %c0_i32 : i32, i32
  }
}

</mosaic_0001>

<bundles_post_ra>
// kernel: tpu_custom_call.1
= control target key start
LH: loop header
LB: loop body
LE: loop exit
PB: predicated region body
PF: predicated region fallthrough
CT: control target
= control target key end

     0   :  { %s197_s12 = smov [#allocation3]   ;;  %s231_s0 = inlined_call_operand.vmem [shape: s32[24], index: 0, kind: input, shape index: {}]   ;;  %s232_s1 = inlined_call_operand.vmem [shape: f32[160,32], index: 1, kind: input, shape index: {}]   ;;  %s233_s2 = inlined_call_operand.hbm [shape: f32[8,96], index: 2, kind: output, shape index: {}]  }
   0x1   :  { %s8_s11 = sshll.u32 %s231_s0, 4  ;;  %s9_s11 = int_to_ptr.vmem [resolvable:$true] %s8_s11 }
   0x2   :  { %11 = dma.vmem_to_smem %s9_s11, 16, %s197_s12, [#allocation2] }
   0x3   :  { %181 = dma.done.wait [#allocation2], 16 }
   0x4   :  { %182 = vsyncadd [#allocation2], 4294967280 }
   0x5   :  { %14 = sfence }
   0x6   :  { %15 = vsyncpa [#allocation5], 0  ;;  %s185_s13 = smov 0  }
   0x7 LB: > { %s26_s14 = sld [smem:[#allocation3 + %s187_s13]]  ;;  %vm30_vm0 = vcmask 253952   ;;  %s29_s18 = scalar_lea.vmem [#allocation4], %s187_s13  ;;  %s187_s13 = sphi %s185_s13, %s24_s13  }
   0x8   : > { %s24_s13 = sadd.s32 1, %s187_s13  }
   0x9   : > { %p21_p0 = scmp.ge.s32.totalorder %s24_s13, 8  }
   0xa   :  { %s189_s0 = smov (%p21_p0), 0  }
   0xb   :  { %23 = sbr.rel (!%p21_p0) target bundleno = 7 (0x7), region = 51 }
   0xd   : > { %s27_s17 = scalar_lea.vmem %s232_s1, %s26_s14 }
   0xe   : > { %v28_v0 = vld [vmem:[%s27_s17] sm:$0x1] }
   0xf   : > { %31 = vst.msk [vmem:[%s29_s18] sm:$0x1] %vm30_vm0, %v28_v0 }
  0x10 LB: > { %s39_s19 = sadd.s32 8, %s191_s0  ;;  %s198_s24 = smov 32   ;;  %vm48_vm1 = vcmask 516352   ;;  %s191_s0 = sphi %s189_s0, %s37_s0  }
  0x11   : > { %s40_s20 = sld [smem:[#allocation3 + %s39_s19]]  ;;  %s47_s25 = scalar_lea.vmem [#allocation4], %s191_s0 }
  0x12   : > { %s37_s0 = sadd.s32 1, %s191_s0  }
  0x13   : > { %p34_p1 = scmp.ge.s32.totalorder %s37_s0, 8  }
  0x14   :  { %s193_s26 = smov (%p34_p1), 0  }
  0x17   : > { %s41_s23 = scalar_lea.vmem %s232_s1, %s40_s20 }
  0x18   : > { %v42_v1 = vld [vmem:[%s41_s23] sm:$0x1] }
  0x19   : > { %44 = vrot.lane.b32.xlu0 %v42_v1, %s198_s24 }
  0x88   :  { %36 = sbr.rel (!%p34_p1) target bundleno = 16 (0x10), region = 62 }
  0x8b   : > { %v45_v2 = vpop.permute.xlu0 %44 }
  0x8c   : > { %49 = vst.msk [vmem:[%s47_s25] sm:$0x1] %vm48_vm1, %v45_v2 }
  0x8d LB: > { %s57_s27 = sadd.s32 16, %s195_s26  ;;  %s199_s4 = smov 64   ;;  %vm66_vm2 = vcmask 778752   ;;  %s195_s26 = sphi %s193_s26, %s55_s26  }
  0x8e   : > { %s58_s28 = sld [smem:[#allocation3 + %s57_s27]]  ;;  %s65_s5 = scalar_lea.vmem [#allocation4], %s195_s26 }
  0x8f   : > { %s55_s26 = sadd.s32 1, %s195_s26  }
  0x90   : > { %p52_p2 = scmp.ge.s32.totalorder %s55_s26, 8  }
  0x91   :  { %s75_s8 = sshll.u32 (%p52_p2), %s233_s2, 4  ;;  %s200_s9 = smov (%p52_p2), [#allocation4]   ;;  %s76_s8 = int_to_ptr.hbm [resolvable:$true] %s75_s8 }
  0x92   :  { %s73_s10 = sshll.u32 (%p52_p2), %s200_s9, 4  ;;  %s74_s10 = int_to_ptr.vmem [resolvable:$true] %s73_s10 }
  0x94   : > { %s59_s3 = scalar_lea.vmem %s232_s1, %s58_s28 }
  0x95   : > { %v60_v3 = vld [vmem:[%s59_s3] sm:$0x1] }
  0x96   : > { %62 = vrot.lane.b32.xlu0 %v60_v3, %s199_s4 }
 0x105   :  { %54 = sbr.rel (!%p52_p2) target bundleno = 141 (0x8d), region = 73 }
 0x108   : > { %v63_v4 = vpop.permute.xlu0 %62 }
 0x109   : > { %67 = vst.msk [vmem:[%s65_s5] sm:$0x1] %vm66_vm2, %v63_v4 }
 0x10a   :  { %78 = dma.vmem_to_hbm [thread:$0]  %s74_s10, 128, %s76_s8, [#allocation5]  }
 0x10b   :  { %183 = dma.done.wait [#allocation5], 128  }
 0x10c   :  { %184 = vsyncadd [#allocation5], 4294967168 }
 0x10d   :  { %83 = vsyncpa [#allocation5], 1 }

</bundles_post_ra>
